<compile_context>
chip_gen: v7x
topology: tpu7x:2x2x1
jax: 0.10.0
libtpu: 0.0.40
codegen_flags: <defaults>
</compile_context>

<pallas_src>
import jax
import jax.numpy as jnp
from jax.experimental import pallas as pl
from jax.experimental.pallas import tpu as pltpu


# --------------------------------------------------------------------------- #
# Kernel
# --------------------------------------------------------------------------- #
def _graph_embeddings_kernel(x_ref, w_ref, b_ref, o_ref):
    # Dense matmul on the MXU, f32 accumulation (operands may be bf16).
    y = jnp.dot(x_ref[...], w_ref[...], preferred_element_type=jnp.float32)
    # Bias add + ReLU on the VPU (bias kept in f32), store in output dtype.
    y = y + b_ref[...]
    o_ref[...] = jnp.maximum(y, 0.0).astype(o_ref.dtype)


# --------------------------------------------------------------------------- #
# Helpers
# --------------------------------------------------------------------------- #
def _round_up(v: int, m: int) -> int:
    return (v + m - 1) // m * m


def _vmem_capacity_bytes() -> int:
    """Per-chip VMEM capacity (clamped budget source). Conservative fallback."""
    try:
        return int(pltpu.get_tpu_info().vmem_capacity_bytes)
    except Exception:
        return 64 << 20  # v7x per-TensorCore VMEM — safe lower bound everywhere


_SINGLE_BUFFER_OK = None


def _single_buffer_constants_supported() -> bool:
    """Feature-detect pipeline_mode=pl.Buffered(1) (single-buffered constant
    operands) with one tiny throwaway compile; result is cached."""
    global _SINGLE_BUFFER_OK
    if _SINGLE_BUFFER_OK is None:
        try:
            def _probe_kernel(x_ref, o_ref):
                o_ref[...] = x_ref[...]

            probe = pl.pallas_call(
                _probe_kernel,
                out_shape=jax.ShapeDtypeStruct((8, 128), jnp.float32),
                grid=(1,),
                in_specs=[pl.BlockSpec((8, 128), lambda i: (0, 0),
                                       pipeline_mode=pl.Buffered(1))],
                out_specs=pl.BlockSpec((8, 128), lambda i: (0, 0)),
            )
            jax.block_until_ready(probe(jnp.zeros((8, 128), jnp.float32)))
            _SINGLE_BUFFER_OK = True
        except Exception:
            _SINGLE_BUFFER_OK = False
    return _SINGLE_BUFFER_OK


# --------------------------------------------------------------------------- #
# One-time parameter preprocessing (hoisted out of the per-call path)
# --------------------------------------------------------------------------- #
def prepare_graph_embeddings(weight_nd, mask_nd, bias, *, use_bf16=True):
    """Fuse the sparsity mask into the weight, pad to lane-dense D and cast the
    MXU operand dtype — ONCE, outside the forward path.

    weight_nd, mask_nd: [nodes_size, d_model] (x @ W layout, i.e. the PyTorch
    nn.Linear weight transposed); bias: [d_model] or [1, d_model].
    Returns (w_prepared [N, D_pad] op_dtype, bias_prepared [1, D_pad] f32, d_model).
    """
    N, D = weight_nd.shape
    # Fuse in f32 so masked entries are exactly zero before any downcast.
    w_fused = weight_nd.astype(jnp.float32) * mask_nd.astype(jnp.float32)
    b = jnp.reshape(bias, (1, D)).astype(jnp.float32)

    # Lane-dense D: multiple of 128; multiple of 256 once D > 128 so v6e/v7x
    # MXU passes (2x256^2) are fully populated.
    D_pad = max(128, _round_up(D, 256 if D > 128 else 128))
    if D_pad != D:
        w_fused = jnp.pad(w_fused, ((0, 0), (0, D_pad - D)))
        b = jnp.pad(b, ((0, 0), (0, D_pad - D)))

    op_dtype = jnp.bfloat16 if use_bf16 else jnp.float32
    # TODO(synk): optional fp8 weight/activation path for v7x (MXU bf16+fp8)
    # once accuracy is validated against the reference.
    return w_fused.astype(op_dtype), b, D


# --------------------------------------------------------------------------- #
# Forward pass
# --------------------------------------------------------------------------- #
def graph_embeddings(x, w_prepared, bias_prepared, *, d_model, tile_m=1024,
                     out_dtype=None, single_buffer_constants=False):
    """ReLU(x @ (W*mask) + b) using the pre-fused / padded / casted weight.

    x: [..., nodes_size]; w_prepared: [nodes_size, D_pad] (MXU operand dtype);
    bias_prepared: [1, D_pad] f32. Returns [..., d_model] in `out_dtype`
    (defaults to x.dtype).
    """
    lead = x.shape[:-1]
    N = x.shape[-1]
    N_w, D_pad = w_prepared.shape
    assert N == N_w, (N, N_w)
    op_dtype = w_prepared.dtype
    out_dtype = x.dtype if out_dtype is None else out_dtype

    # Fold all leading dims into one batch axis -> a single large pallas_call.
    B = 1
    for s in lead:
        B *= int(s)
    x2 = x.reshape(B, N).astype(op_dtype)

    op_bytes = jnp.dtype(op_dtype).itemsize
    out_bytes = jnp.dtype(out_dtype).itemsize
    sub = 16 if op_bytes == 2 else 8  # bf16 sublane packing -> 16-row tiles

    # --- Per-chip VMEM budget. ---
    vmem_cap = _vmem_capacity_bytes()
    budget = int(vmem_cap * 0.7)

    # --- Column (D) tiling: resident weight if it fits, else stream slabs. ---
    w_bufs_resident = 1 if single_buffer_constants else 2
    if N * D_pad * op_bytes * w_bufs_resident <= budget // 2:
        TD = D_pad
        w_bufs = w_bufs_resident
    else:
        # Stream 256-aligned weight slabs (double-buffered by the pipeline).
        w_bufs = 2
        max_td = max(256, ((budget // 2) // (2 * N * op_bytes)) // 256 * 256)
        TD = 128 if D_pad == 128 else 256
        t = 256
        while t <= min(max_td, D_pad):
            if D_pad % t == 0:
                TD = t
            t += 256
    d_tiles = D_pad // TD
    single_buffer = single_buffer_constants and d_tiles == 1

    # --- Batch (M) tiling from the remaining VMEM budget. ---
    remaining = budget - w_bufs * N * TD * op_bytes - w_bufs * TD * 4
    per_row = 2 * (N * op_bytes + TD * out_bytes)   # double-buffered x & out
    tm_cap = max(sub, remaining // per_row)
    TM = min(tile_m, tm_cap, _round_up(B, sub))
    TM = max(sub, (TM // sub) * sub)
    B_pad = _round_up(B, TM)
    if B_pad != B:
        x2 = jnp.pad(x2, ((0, B_pad - B), (0, 0)))
    grid = (B_pad // TM, d_tiles)

    # --- Megacore: parallelize the axis that does NOT duplicate the dominant
    #     HBM stream (weight-heavy -> split D; activation-heavy -> split batch).
    weight_stream_bytes = N * D_pad * op_bytes
    act_stream_bytes = B_pad * N * op_bytes
    if weight_stream_bytes > act_stream_bytes:
        dim_sem = ("arbitrary", "parallel")
    else:
        dim_sem = ("parallel", "arbitrary")

    # --- VMEM limit: real footprint (with actual buffer counts), clamped to
    #     the chip capacity with headroom. ---
    vmem_needed = (w_bufs * N * TD * op_bytes + w_bufs * TD * 4
                   + 2 * TM * N * op_bytes + 2 * TM * TD * out_bytes)
    vmem_limit = int(min(max(2 * vmem_needed, 16 << 20), int(vmem_cap * 0.85)))

    cost = pl.CostEstimate(
        flops=2 * B_pad * N * D_pad,
        transcendentals=0,
        bytes_accessed=(B_pad * N * op_bytes + N * D_pad * op_bytes
                        + D_pad * 4 + B_pad * D_pad * out_bytes),
    )

    const_kwargs = {"pipeline_mode": pl.Buffered(1)} if single_buffer else {}
    in_specs = [
        # x tile: pipelined over batch, resident across the inner D axis.
        pl.BlockSpec((TM, N), lambda i, j: (i, 0)),
        # Fused weight slab: resident (single-buffered) or streamed over D.
        pl.BlockSpec((N, TD), lambda i, j: (0, j), **const_kwargs),
        # Bias slab.
        pl.BlockSpec((1, TD), lambda i, j: (0, j), **const_kwargs),
    ]
    out_spec = pl.BlockSpec((TM, TD), lambda i, j: (i, j))

    out_padded = pl.pallas_call(
        _graph_embeddings_kernel,
        out_shape=jax.ShapeDtypeStruct((B_pad, D_pad), out_dtype),
        grid=grid,
        in_specs=in_specs,
        out_specs=out_spec,
        compiler_params=pltpu.CompilerParams(
            dimension_semantics=dim_sem,
            vmem_limit_bytes=vmem_limit,
        ),
        cost_estimate=cost,
    )(x2, w_prepared, bias_prepared)

    # Slice away batch / lane padding and restore leading dims.
    out = out_padded[:B, :d_model]
    return out.reshape(lead + (d_model,))

    # TODO(synk): if nodes_size ever grows so large that a (N, 256) weight slab
    # no longer fits VMEM, add a trailing "arbitrary" K grid axis with an f32
    # VMEM accumulator and move bias+ReLU into a pl.when(k == last) epilogue.


def make_graph_embeddings(weight_nd, mask_nd, bias, *, use_bf16=True,
                          out_dtype=None, tile_m=1024):
    """Return a jitted forward(x) closure with the fused / padded / casted
    weight cached (the per-call path is just the pallas_call)."""
    w_p, b_p, d_model = prepare_graph_embeddings(
        weight_nd, mask_nd, bias, use_bf16=use_bf16)
    sb = _single_buffer_constants_supported()   # probe once, outside any trace

    def forward(x):
        return graph_embeddings(x, w_p, b_p, d_model=d_model, tile_m=tile_m,
                                out_dtype=out_dtype, single_buffer_constants=sb)

    # NOTE: at the module's tiny default shapes (B=8, N=16, D=32) the whole op
    # is below one grid step of useful work; folding leading/time dims into the
    # batch (supported above) is the main lever — or let XLA fuse it entirely.
    return jax.jit(forward)


def _reference(x, weight_nd, mask_nd, bias_1d):
    return jnp.maximum(x @ (weight_nd * mask_nd) + bias_1d, 0.0)


if __name__ == "__main__":
    # Small shapes consistent with the module: nodes_size=16, d_model=32.
    batch, nodes_size, d_model = 8, 16, 32

    key = jax.random.PRNGKey(0)
    k_x, k_w, k_b, k_m = jax.random.split(key, 4)

    x = jax.random.normal(k_x, (batch, nodes_size), dtype=jnp.float32)

    # Deterministic parameter init (Kaiming-uniform-style bound, like nn.Linear).
    bound = 1.0 / (nodes_size ** 0.5)
    # PyTorch weight is [d_model, nodes_size]; store transposed for x @ W.
    weight_nd = jax.random.uniform(
        k_w, (nodes_size, d_model), minval=-bound, maxval=bound, dtype=jnp.float32
    )
    bias_1d = jax.random.uniform(
        k_b, (1, d_model), minval=-bound, maxval=bound, dtype=jnp.float32
    )
    # Synthetic graph_dependency: binary mask [nodes_size, d_model], ~50% sparse.
    mask_nd = (jax.random.uniform(k_m, (nodes_size, d_model)) > 0.5).astype(
        jnp.float32
    )

    # One-time setup (mask fuse / pad / cast hoisted out of the per-call path);
    # bf16 output attacks the store-bound regime at small nodes_size.
    fwd = make_graph_embeddings(weight_nd, mask_nd, bias_1d,
                                use_bf16=True, out_dtype=jnp.bfloat16)
    out = jax.block_until_ready(fwd(x))

    ref = _reference(x, weight_nd, mask_nd, bias_1d)
    assert out.shape == (batch, d_model)
    assert out.dtype == jnp.bfloat16
    # bf16 operands + bf16 output with f32 accumulation -> loosened tolerance.
    assert jnp.allclose(out.astype(jnp.float32), ref, atol=3e-2, rtol=3e-2)

    print("KERNEL_OK")
</pallas_src>

<mosaic_0001>
module attributes {stable_mosaic.version = 11 : i64} {
  func.func @_probe_kernel(%arg0: i32, %arg1: memref<8x128xf32, #tpu.memory_space<vmem>>, %arg2: memref<8x128xf32, #tpu.memory_space<vmem>>) attributes {dimension_semantics = [#tpu.dimension_semantics<arbitrary>], iteration_bounds = array<i64: 1>, scalar_prefetch = 0 : i64, scratch_operands = 0 : i64, tpu.core_type = #tpu.core_type<tc>, window_params = [{pipeline_mode = #tpu.pipeline_mode<synchronous>, transform_indices = @transform_0, window_bounds = array<i64: 8, 128>}, {pipeline_mode = #tpu.pipeline_mode<synchronous>, transform_indices = @transform_1, window_bounds = array<i64: 8, 128>}]} {
    %c0 = arith.constant 0 : index
    %c0_0 = arith.constant 0 : index
    %0 = vector.load %arg1[%c0, %c0_0] : memref<8x128xf32, #tpu.memory_space<vmem>>, vector<8x128xf32>
    %c0_1 = arith.constant 0 : index
    %c0_2 = arith.constant 0 : index
    %1 = vector.load %arg2[%c0_1, %c0_2] : memref<8x128xf32, #tpu.memory_space<vmem>>, vector<8x128xf32>
    tpu.vector_store %arg2[%c0_1, %c0_2], %0 {strides = array<i32>} : memref<8x128xf32, #tpu.memory_space<vmem>>, vector<8x128xf32>,
    return
  }
  func.func @transform_0(%arg0: i32) -> (i32, i32) {
    %c0_i32 = arith.constant 0 : i32
    %c0_i32_0 = arith.constant 0 : i32
    %c0_i32_1 = arith.constant 0 : i32
    return %c0_i32, %c0_i32_0 : i32, i32
  }
  func.func @transform_1(%arg0: i32) -> (i32, i32) {
    %c0_i32 = arith.constant 0 : i32
    %c0_i32_0 = arith.constant 0 : i32
    %c0_i32_1 = arith.constant 0 : i32
    return %c0_i32, %c0_i32_0 : i32, i32
  }
}

module attributes {stable_mosaic.version = 11 : i64} {
  func.func @_graph_embeddings_kernel(%arg0: i32, %arg1: i32, %arg2: memref<16x16xbf16, #tpu.memory_space<vmem>>, %arg3: memref<16x128xbf16, #tpu.memory_space<vmem>>, %arg4: memref<1x128xf32, #tpu.memory_space<vmem>>, %arg5: memref<16x128xbf16, #tpu.memory_space<vmem>>) attributes {dimension_semantics = [#tpu.dimension_semantics<arbitrary>, #tpu.dimension_semantics<parallel>], iteration_bounds = array<i64: 1, 1>, scalar_prefetch = 0 : i64, scratch_operands = 0 : i64, tpu.core_type = #tpu.core_type<tc>, window_params = [{transform_indices = @transform_0, window_bounds = array<i64: 16, 16>}, {transform_indices = @transform_1, window_bounds = array<i64: 16, 128>}, {transform_indices = @transform_2, window_bounds = array<i64: 1, 128>}, {transform_indices = @transform_3, window_bounds = array<i64: 16, 128>}]} {
    %c0 = arith.constant 0 : index
    %c0_0 = arith.constant 0 : index
    %0 = vector.load %arg2[%c0, %c0_0] : memref<16x16xbf16, #tpu.memory_space<vmem>>, vector<16x16xbf16>
    %c0_1 = arith.constant 0 : index
    %c0_2 = arith.constant 0 : index
    %1 = vector.load %arg3[%c0_1, %c0_2] : memref<16x128xbf16, #tpu.memory_space<vmem>>, vector<16x128xbf16>
    %cst = arith.constant dense<0.000000e+00> : vector<16x128xf32>
    %2 = tpu.matmul %0, %1, %cst {dimension_numbers = #tpu.dot_dimension_numbers<[1], [0], [0], [1], [0, 0, 1, 1], [], []>} : vector<16x16xbf16>, vector<16x128xbf16>, vector<16x128xf32> -> vector<16x128xf32>
    %c0_3 = arith.constant 0 : index
    %c0_4 = arith.constant 0 : index
    %3 = vector.load %arg4[%c0_3, %c0_4] : memref<1x128xf32, #tpu.memory_space<vmem>>, vector<1x128xf32>
    %4 = vector.broadcast %3 : vector<1x128xf32> to vector<16x128xf32>
    %5 = arith.addf %2, %4 : vector<16x128xf32>
    %cst_5 = arith.constant 0.000000e+00 : f32
    %6 = vector.broadcast %cst_5 : f32 to vector<16x128xf32>
    %7 = arith.maximumf %5, %6 : vector<16x128xf32>
    %8 = arith.truncf %7 : vector<16x128xf32> to vector<16x128xbf16>
    %c0_6 = arith.constant 0 : index
    %c0_7 = arith.constant 0 : index
    %9 = vector.load %arg5[%c0_6, %c0_7] : memref<16x128xbf16, #tpu.memory_space<vmem>>, vector<16x128xbf16>
    tpu.vector_store %arg5[%c0_6, %c0_7], %8 {strides = array<i32>} : memref<16x128xbf16, #tpu.memory_space<vmem>>, vector<16x128xbf16>,
    return
  }
  func.func @transform_0(%arg0: i32, %arg1: i32) -> (i32, i32) {
    %c0_i32 = arith.constant 0 : i32
    %c0_i32_0 = arith.constant 0 : i32
    return %arg0, %c0_i32 : i32, i32
  }
  func.func @transform_1(%arg0: i32, %arg1: i32) -> (i32, i32) {
    %c0_i32 = arith.constant 0 : i32
    %c0_i32_0 = arith.constant 0 : i32
    return %c0_i32, %arg1 : i32, i32
  }
  func.func @transform_2(%arg0: i32, %arg1: i32) -> (i32, i32) {
    %c0_i32 = arith.constant 0 : i32
    %c0_i32_0 = arith.constant 0 : i32
    return %c0_i32, %arg1 : i32, i32
  }
  func.func @transform_3(%arg0: i32, %arg1: i32) -> (i32, i32) {
    %c0_i32 = arith.constant 0 : i32
    return %arg0, %arg1 : i32, i32
  }
}

</mosaic_0001>

<bundles_post_ra>
// kernel: tpu_custom_call.1
= control target key start
LH: loop header
LB: loop body
LE: loop exit
PB: predicated region body
PF: predicated region fallthrough
CT: control target
= control target key end

     0   :  { %6 = vsyncpa [#allocation3], 0  ;;  %s124_s0 = inlined_call_operand.hbm [shape: f32[8,128], index: 0, kind: input, shape index: {}]   ;;  %s125_s1 = inlined_call_operand.hbm [shape: f32[8,128], index: 1, kind: output, shape index: {}]  }
   0x1   :  { %7 = vsyncpa [#allocation4], 0  ;;  %s88_s6 = smov [#allocation2]   ;;  %s40_s10 = scalar_lea.hbm %s124_s0, 128 }
   0x2   :  { %s14_s7 = sshll.u32 %s88_s6, 4  ;;  %p41_p0 = scmp.ne.s32.totalorder %s124_s0, %s40_s10  ;;  %s15_s7 = int_to_ptr.vmem [resolvable:$true] %s14_s7 }
   0x3   :  { %p44_p1 = scmp.lt.u32.totalorder %s40_s10, %s124_s0 }
   0x5   :  { %p46_p2 = pnand %p44_p1, %p41_p0 }
   0x7   :  { %49 = shalt.err (!%p46_p2)
}
   0x8   :  { %s50_s15 = scalar_lea.vmem %s15_s7, 128  ;;  %p55_p4 = scmp.lt.s32.totalorder %s15_s7, %s15_s7 }
   0x9   :  { %p51_p3 = scmp.ne.s32.totalorder %s15_s7, %s50_s15  ;;  %p56_p5 = scmp.lt.s32.totalorder %s50_s15, %s50_s15 }
   0xb   :  { %p57_p6 = por %p56_p5, %p55_p4 }
   0xd   :  { %p58_p7 = pnand %p57_p6, %p51_p3 }
   0xf   :  { %61 = shalt.err (!%p58_p7)
}
  0x10   :  { %17 = dma.hbm_to_vmem [thread:$0]  %s124_s0, 128, %s15_s7, [#allocation3]  }
  0x11   :  { %84 = dma.done.wait [#allocation3], 128  }
  0x12   :  { %85 = vsyncadd [#allocation3], 4294967168  ;;  %s89_s18 = smov [#allocation5]   ;;  %v21_v0 = vld [vmem:[#allocation2] sm:$0xff] }
  0x13   :  { %s29_s19 = sshll.u32 %s89_s18, 4  ;;  %22 = vst [vmem:[#allocation5] sm:$0xff] %v21_v0  ;;  %s30_s19 = int_to_ptr.vmem [resolvable:$true] %s29_s19 }
  0x14   :  { %s62_s20 = scalar_lea.vmem %s30_s19, 128  ;;  %p67_p9 = scmp.lt.s32.totalorder %s30_s19, %s30_s19 }
  0x15   :  { %p63_p8 = scmp.ne.s32.totalorder %s30_s19, %s62_s20  ;;  %p68_p10 = scmp.lt.s32.totalorder %s62_s20, %s62_s20 }
  0x17   :  { %p69_p11 = por %p68_p10, %p67_p9 }
  0x19   :  { %p70_p12 = pnand %p69_p11, %p63_p8 }
  0x1b   :  { %73 = shalt.err (!%p70_p12)
}
  0x1c   :  { %s74_s23 = scalar_lea.hbm %s125_s1, 128 }
  0x1d   :  { %p75_p13 = scmp.ne.s32.totalorder %s125_s1, %s74_s23  ;;  %p78_p0 = scmp.lt.u32.totalorder %s74_s23, %s125_s1 }
  0x1f   :  { %p80_p1 = pnand %p78_p0, %p75_p13 }
  0x21   :  { %83 = shalt.err (!%p80_p1)
}
  0x22   :  { %32 = dma.vmem_to_hbm [thread:$0]  %s30_s19, 128, %s125_s1, [#allocation4]  }
  0x23   :  { %86 = dma.done.wait [#allocation4], 128  }
  0x24   :  { %87 = vsyncadd [#allocation4], 4294967168 }
  0x25   :  { %36 = vsyncpa [#allocation3], 1 }
  0x26   :  { %37 = vsyncpa [#allocation4], 1 }

// kernel: forward.1
= control target key start
LH: loop header
LB: loop body
LE: loop exit
PB: predicated region body
PF: predicated region fallthrough
CT: control target
= control target key end

     0   :  { %v123_v0 = vmov 0.0   ;;  %vm124_vm0 = vmmov 0   ;;  %vm37_vm1 = vcmask 130048   ;;  %s157_s1 = inlined_call_operand.vmem [shape: bf16[16,128], index: 1, kind: input, shape index: {}]   ;;  %s158_s0 = inlined_call_operand.vmem [shape: bf16[16,16], index: 0, kind: input, shape index: {}]   ;;  %s159_s2 = inlined_call_operand.vmem [shape: f32[1,128], index: 2, kind: input, shape index: {}]   ;;  %s160_s3 = inlined_call_operand.vmem [shape: bf16[16,128], index: 3, kind: output, shape index: {}]  }
   0x1   :  { %113 = vmatprep.subr.bf16.mxu0 %v123_v0  ;;  %v121_v1 = vld [vmem:[%s157_s1] sm:$0xff]   ;;  %115 = vmatprep.mubr.msk.bf16.mxu0 %vm124_vm0, %v123_v0 }
   0x2   :  { %v122_v2 = vld [vmem:[%s158_s0] sm:$0xff]   ;;  %114 = vmatpush3.bf16.msra.mxu0 %v121_v1 }
   0x3   :  { %v98_v3 = vld [vmem:[%s159_s2] ss:$0 sm:$0xff] }
   0x5   :  { %116 = vmatmul.mubr.msk.bf16.vlgmr.msra.gmra.mrb[0].mxu0 %vm37_vm1, %v122_v2 }
  0xd8   :  { %v75_v4 = vpop.f32.mrb[0].mxu0 }
  0xd9   :  { %v76_v5 = vadd.f32 %v98_v3, %v75_v4  ;;  %v117_v6 = vpop.f32.mrb[1].mxu0 }
  0xda   :  { %v78_v7 = vpop.f32.mrb[2].mxu0 }
  0xdb   :  { %v79_v8 = vadd.f32 %v98_v3, %v78_v7  ;;  %v118_v9 = vpop.f32.mrb[3].mxu0  ;;  %v82_v10 = vmax.f32 %v76_v5, 0.0 }
  0xdd   :  { %v83_v11 = vmax.f32 %v79_v8, 0.0 }
  0xdf   :  { %v109_v12 = vpack.c.bf16 %v83_v11, %v82_v10 }
  0xe1   :  { %110 = vst [vmem:[%s160_s3] sm:$0xff] %v109_v12  }

</bundles_post_ra>
